<compile_context>
chip_gen: v6e
topology: v6e:2x2x1
jax: 0.10.0
libtpu: 0.0.40
codegen_flags: <defaults>
</compile_context>

<pallas_src>
import jax
import jax.numpy as jnp
from jax.experimental import pallas as pl
from jax.experimental.pallas import tpu as pltpu

LANE = 128
SUBLANE = 8


def actor_mlp_kernel(xT_ref, w1t_ref, b1_ref, w2t_ref, b2_ref, w3t_ref, b3_ref,
                     oT_ref):
    """Fused 3-layer MLP in feature-major layout: activations are (feat, TB)."""
    # Layer 1: h1 = relu(W1^T @ x^T + b1)   -- bf16 MXU, f32 accum, f32 epilogue
    h1 = jnp.dot(w1t_ref[...], xT_ref[...], preferred_element_type=jnp.float32)
    h1 = jnp.maximum(h1 + b1_ref[...], 0.0)
    # Layer 2: h2 = relu(W2^T @ h1 + b2)
    h2 = jnp.dot(w2t_ref[...], h1.astype(w2t_ref.dtype),
                 preferred_element_type=jnp.float32)
    h2 = jnp.maximum(h2 + b2_ref[...], 0.0)
    # Layer 3: o = tanh(W3^T @ h2 + b3)   (output rows padded 4 -> 8 sublanes)
    h3 = jnp.dot(w3t_ref[...], h2.astype(w3t_ref.dtype),
                 preferred_element_type=jnp.float32)
    oT_ref[...] = jnp.tanh(h3 + b3_ref[...])


def _round_up(n, m):
    return ((n + m - 1) // m) * m


def actor_forward(x, params, *, max_batch_tile=512, weight_dtype=jnp.bfloat16):
    """Fused 3-layer MLP forward pass, tiled over the batch (lane) dimension."""
    assert max_batch_tile % LANE == 0, "max_batch_tile must be a multiple of 128"
    w1, b1, w2, b2, w3, b3 = params  # w: (fan_in, fan_out) f32, b: (fan_out,) f32

    squeeze = False
    if x.ndim == 1:                   # single state -> add batch dim
        x = x[None, :]
        squeeze = True
    B, in_dim = x.shape
    h1_dim = w1.shape[1]
    h2_dim = w2.shape[1]
    out_dim = w3.shape[1]
    out_rows = _round_up(out_dim, SUBLANE)      # pad 4 -> 8 output rows

    # Transposed (feature-major) weights, cast to bf16 (halves weight DMA).
    # Biases stay f32, shaped (feat, 1) for a lane-broadcast in the epilogue.
    w1t = w1.T.astype(weight_dtype)                                  # (h1, in)
    w2t = w2.T.astype(weight_dtype)                                  # (h2, h1)
    w3t = jnp.zeros((out_rows, h2_dim), weight_dtype).at[:out_dim].set(
        w3.T.astype(weight_dtype))                                   # (8, h2)
    b1c = b1.reshape(h1_dim, 1).astype(jnp.float32)
    b2c = b2.reshape(h2_dim, 1).astype(jnp.float32)
    b3c = jnp.zeros((out_rows, 1), jnp.float32).at[:out_dim, 0].set(
        b3.reshape(-1))

    # Batch tile: multiple of 128 lanes so x/out tiles are always lane-dense.
    tb = min(max_batch_tile, _round_up(B, LANE))
    b_pad = _round_up(B, tb)
    xT = x.astype(weight_dtype).T                                    # (in, B)
    if b_pad != B:
        xT = jnp.pad(xT, ((0, 0), (0, b_pad - B)))

    grid = (b_pad // tb,)
    pinned = lambda i: (0, 0)   # weights/biases resident across all batch tiles

    outT = pl.pallas_call(
        actor_mlp_kernel,
        out_shape=jax.ShapeDtypeStruct((out_rows, b_pad), jnp.float32),
        grid=grid,
        in_specs=[
            pl.BlockSpec((in_dim, tb), lambda i: (0, i)),     # x^T tile
            pl.BlockSpec((h1_dim, in_dim), pinned),           # W1^T
            pl.BlockSpec((h1_dim, 1), pinned),                # b1
            pl.BlockSpec((h2_dim, h1_dim), pinned),           # W2^T
            pl.BlockSpec((h2_dim, 1), pinned),                # b2
            pl.BlockSpec((out_rows, h2_dim), pinned),         # W3^T (row-padded)
            pl.BlockSpec((out_rows, 1), pinned),              # b3   (row-padded)
        ],
        out_specs=pl.BlockSpec((out_rows, tb), lambda i: (0, i)),
        compiler_params=pltpu.CompilerParams(
            dimension_semantics=("parallel",),                # megacore on v7x
            vmem_limit_bytes=32 * 1024 * 1024,
        ),
    )(xT, w1t, b1c, w2t, b2c, w3t, b3c)

    out = outT[:out_dim, :B].T                                # (B, out_dim)
    if squeeze:
        out = out[0]
    return out


def init_params(key, input_size=24, h1_size=256, h2_size=256, output_size=4):
    """PyTorch nn.Linear-style init: U(-1/sqrt(fan_in), +1/sqrt(fan_in))."""
    ks = jax.random.split(key, 6)

    def lin(kw, kb, fan_in, fan_out):
        bound = 1.0 / jnp.sqrt(jnp.float32(fan_in))
        w = jax.random.uniform(kw, (fan_in, fan_out), jnp.float32, -bound, bound)
        b = jax.random.uniform(kb, (fan_out,), jnp.float32, -bound, bound)
        return w, b

    w1, b1 = lin(ks[0], ks[1], input_size, h1_size)
    w2, b2 = lin(ks[2], ks[3], h1_size, h2_size)
    w3, b3 = lin(ks[4], ks[5], h2_size, output_size)
    return (w1, b1, w2, b2, w3, b3)


def reference_forward(x, params, weight_dtype=jnp.bfloat16):
    """Pure-JAX reference following the same bf16-weight / f32-accum numerics."""
    w1, b1, w2, b2, w3, b3 = params
    h1 = jnp.dot(x.astype(weight_dtype), w1.astype(weight_dtype),
                 preferred_element_type=jnp.float32) + b1
    h1 = jnp.maximum(h1, 0.0)
    h2 = jnp.dot(h1.astype(weight_dtype), w2.astype(weight_dtype),
                 preferred_element_type=jnp.float32) + b2
    h2 = jnp.maximum(h2, 0.0)
    h3 = jnp.dot(h2.astype(weight_dtype), w3.astype(weight_dtype),
                 preferred_element_type=jnp.float32) + b3
    return jnp.tanh(h3)


if __name__ == "__main__":
    key = jax.random.PRNGKey(0)
    k_params, k_x_small, k_x_big = jax.random.split(key, 3)

    INPUT, H1, H2, OUT = 24, 256, 256, 4
    params = init_params(k_params, INPUT, H1, H2, OUT)

    # Small rollout-style batch (module default use case).
    x_small = jax.random.normal(k_x_small, (2, INPUT), jnp.float32)
    out_small = jax.block_until_ready(actor_forward(x_small, params))
    ref_small = reference_forward(x_small, params)
    assert out_small.shape == (2, OUT), out_small.shape
    assert jnp.allclose(out_small, ref_small, atol=2e-3, rtol=2e-3), "mismatch (B=2)"

    # Larger batch: exercises the batch grid (padding + multiple tiles).
    x_big = jax.random.normal(k_x_big, (1000, INPUT), jnp.float32)
    out_big = jax.block_until_ready(actor_forward(x_big, params))
    ref_big = reference_forward(x_big, params)
    assert out_big.shape == (1000, OUT), out_big.shape
    assert jnp.allclose(out_big, ref_big, atol=2e-3, rtol=2e-3), "mismatch (B=1000)"

    print("KERNEL_OK")
</pallas_src>

<mosaic_0001>
module attributes {stable_mosaic.version = 11 : i64} {
  func.func @actor_mlp_kernel(%arg0: i32, %arg1: memref<24x128xbf16, #tpu.memory_space<vmem>>, %arg2: memref<256x24xbf16, #tpu.memory_space<vmem>>, %arg3: memref<256x1xf32, #tpu.memory_space<vmem>>, %arg4: memref<256x256xbf16, #tpu.memory_space<vmem>>, %arg5: memref<256x1xf32, #tpu.memory_space<vmem>>, %arg6: memref<8x256xbf16, #tpu.memory_space<vmem>>, %arg7: memref<8x1xf32, #tpu.memory_space<vmem>>, %arg8: memref<8x128xf32, #tpu.memory_space<vmem>>) attributes {dimension_semantics = [#tpu.dimension_semantics<parallel>], iteration_bounds = array<i64: 1>, scalar_prefetch = 0 : i64, scratch_operands = 0 : i64, tpu.core_type = #tpu.core_type<tc>, window_params = [{transform_indices = @transform_0, window_bounds = array<i64: 24, 128>}, {pipeline_mode = #tpu.pipeline_mode<synchronous>, transform_indices = @transform_1, window_bounds = array<i64: 256, 24>}, {pipeline_mode = #tpu.pipeline_mode<synchronous>, transform_indices = @transform_2, window_bounds = array<i64: 256, 1>}, {pipeline_mode = #tpu.pipeline_mode<synchronous>, transform_indices = @transform_3, window_bounds = array<i64: 256, 256>}, {pipeline_mode = #tpu.pipeline_mode<synchronous>, transform_indices = @transform_4, window_bounds = array<i64: 256, 1>}, {pipeline_mode = #tpu.pipeline_mode<synchronous>, transform_indices = @transform_5, window_bounds = array<i64: 8, 256>}, {pipeline_mode = #tpu.pipeline_mode<synchronous>, transform_indices = @transform_6, window_bounds = array<i64: 8, 1>}, {transform_indices = @transform_7, window_bounds = array<i64: 8, 128>}]} {
    %c0 = arith.constant 0 : index
    %c0_0 = arith.constant 0 : index
    %0 = vector.load %arg2[%c0, %c0_0] : memref<256x24xbf16, #tpu.memory_space<vmem>>, vector<256x24xbf16>
    %c0_1 = arith.constant 0 : index
    %c0_2 = arith.constant 0 : index
    %1 = vector.load %arg1[%c0_1, %c0_2] : memref<24x128xbf16, #tpu.memory_space<vmem>>, vector<24x128xbf16>
    %cst = arith.constant dense<0.000000e+00> : vector<256x128xf32>
    %2 = tpu.matmul %0, %1, %cst {dimension_numbers = #tpu.dot_dimension_numbers<[1], [0], [0], [1], [0, 0, 1, 1], [], []>} : vector<256x24xbf16>, vector<24x128xbf16>, vector<256x128xf32> -> vector<256x128xf32>
    %c0_3 = arith.constant 0 : index
    %c0_4 = arith.constant 0 : index
    %3 = vector.load %arg3[%c0_3, %c0_4] : memref<256x1xf32, #tpu.memory_space<vmem>>, vector<256x1xf32>
    %4 = vector.broadcast %3 : vector<256x1xf32> to vector<256x128xf32>
    %5 = arith.addf %2, %4 : vector<256x128xf32>
    %cst_5 = arith.constant 0.000000e+00 : f32
    %6 = vector.broadcast %cst_5 : f32 to vector<256x128xf32>
    %7 = arith.maximumf %5, %6 : vector<256x128xf32>
    %c0_6 = arith.constant 0 : index
    %c0_7 = arith.constant 0 : index
    %8 = vector.load %arg4[%c0_6, %c0_7] : memref<256x256xbf16, #tpu.memory_space<vmem>>, vector<256x256xbf16>
    %9 = arith.truncf %7 : vector<256x128xf32> to vector<256x128xbf16>
    %cst_8 = arith.constant dense<0.000000e+00> : vector<256x128xf32>
    %10 = tpu.matmul %8, %9, %cst_8 {dimension_numbers = #tpu.dot_dimension_numbers<[1], [0], [0], [1], [0, 0, 1, 1], [], []>} : vector<256x256xbf16>, vector<256x128xbf16>, vector<256x128xf32> -> vector<256x128xf32>
    %c0_9 = arith.constant 0 : index
    %c0_10 = arith.constant 0 : index
    %11 = vector.load %arg5[%c0_9, %c0_10] : memref<256x1xf32, #tpu.memory_space<vmem>>, vector<256x1xf32>
    %12 = vector.broadcast %11 : vector<256x1xf32> to vector<256x128xf32>
    %13 = arith.addf %10, %12 : vector<256x128xf32>
    %cst_11 = arith.constant 0.000000e+00 : f32
    %14 = vector.broadcast %cst_11 : f32 to vector<256x128xf32>
    %15 = arith.maximumf %13, %14 : vector<256x128xf32>
    %c0_12 = arith.constant 0 : index
    %c0_13 = arith.constant 0 : index
    %16 = vector.load %arg6[%c0_12, %c0_13] : memref<8x256xbf16, #tpu.memory_space<vmem>>, vector<8x256xbf16>
    %17 = arith.truncf %15 : vector<256x128xf32> to vector<256x128xbf16>
    %cst_14 = arith.constant dense<0.000000e+00> : vector<8x128xf32>
    %18 = tpu.matmul %16, %17, %cst_14 {dimension_numbers = #tpu.dot_dimension_numbers<[1], [0], [0], [1], [0, 0, 1, 1], [], []>} : vector<8x256xbf16>, vector<256x128xbf16>, vector<8x128xf32> -> vector<8x128xf32>
    %c0_15 = arith.constant 0 : index
    %c0_16 = arith.constant 0 : index
    %19 = vector.load %arg7[%c0_15, %c0_16] : memref<8x1xf32, #tpu.memory_space<vmem>>, vector<8x1xf32>
    %20 = vector.broadcast %19 : vector<8x1xf32> to vector<8x128xf32>
    %21 = arith.addf %18, %20 : vector<8x128xf32>
    %22 = math.tanh %21 : vector<8x128xf32>
    %c0_17 = arith.constant 0 : index
    %c0_18 = arith.constant 0 : index
    %23 = vector.load %arg8[%c0_17, %c0_18] : memref<8x128xf32, #tpu.memory_space<vmem>>, vector<8x128xf32>
    tpu.vector_store %arg8[%c0_17, %c0_18], %22 {strides = array<i32>} : memref<8x128xf32, #tpu.memory_space<vmem>>, vector<8x128xf32>,
    return
  }
  func.func @transform_0(%arg0: i32) -> (i32, i32) {
    %c0_i32 = arith.constant 0 : i32
    %c0_i32_0 = arith.constant 0 : i32
    return %c0_i32, %arg0 : i32, i32
  }
  func.func @transform_1(%arg0: i32) -> (i32, i32) {
    %c0_i32 = arith.constant 0 : i32
    %c0_i32_0 = arith.constant 0 : i32
    %c0_i32_1 = arith.constant 0 : i32
    return %c0_i32, %c0_i32_0 : i32, i32
  }
  func.func @transform_2(%arg0: i32) -> (i32, i32) {
    %c0_i32 = arith.constant 0 : i32
    %c0_i32_0 = arith.constant 0 : i32
    %c0_i32_1 = arith.constant 0 : i32
    return %c0_i32, %c0_i32_0 : i32, i32
  }
  func.func @transform_3(%arg0: i32) -> (i32, i32) {
    %c0_i32 = arith.constant 0 : i32
    %c0_i32_0 = arith.constant 0 : i32
    %c0_i32_1 = arith.constant 0 : i32
    return %c0_i32, %c0_i32_0 : i32, i32
  }
  func.func @transform_4(%arg0: i32) -> (i32, i32) {
    %c0_i32 = arith.constant 0 : i32
    %c0_i32_0 = arith.constant 0 : i32
    %c0_i32_1 = arith.constant 0 : i32
    return %c0_i32, %c0_i32_0 : i32, i32
  }
  func.func @transform_5(%arg0: i32) -> (i32, i32) {
    %c0_i32 = arith.constant 0 : i32
    %c0_i32_0 = arith.constant 0 : i32
    %c0_i32_1 = arith.constant 0 : i32
    return %c0_i32, %c0_i32_0 : i32, i32
  }
  func.func @transform_6(%arg0: i32) -> (i32, i32) {
    %c0_i32 = arith.constant 0 : i32
    %c0_i32_0 = arith.constant 0 : i32
    %c0_i32_1 = arith.constant 0 : i32
    return %c0_i32, %c0_i32_0 : i32, i32
  }
  func.func @transform_7(%arg0: i32) -> (i32, i32) {
    %c0_i32 = arith.constant 0 : i32
    %c0_i32_0 = arith.constant 0 : i32
    return %c0_i32, %arg0 : i32, i32
  }
}

</mosaic_0001>

<bundles_post_ra>
// kernel: tpu_custom_call.1
= control target key start
LH: loop header
LB: loop body
LE: loop exit
PB: predicated region body
PF: predicated region fallthrough
CT: control target
= control target key end

     0   :  { %vm393_vm0 = vcmask 1043456   ;;  %v1638_v2 = vmov 0   ;;  %vm344_vm1 = vcmask 195584   ;;  %s2282_s0 = inlined_call_operand.vmem [shape: bf16[24,128], index: 0, kind: input, shape index: {}]   ;;  %s2283_s1 = inlined_call_operand.vmem [shape: bf16[256,24], index: 1, kind: input, shape index: {}]   ;;  %s2284_s2 = inlined_call_operand.vmem [shape: f32[256,1], index: 2, kind: input, shape index: {}]   ;;  %s2285_s3 = inlined_call_operand.vmem [shape: bf16[256,256], index: 3, kind: input, shape index: {}]   ;;  %s2286_s4 = inlined_call_operand.vmem [shape: f32[256,1], index: 4, kind: input, shape index: {}]   ;;  %s2287_s5 = inlined_call_operand.vmem [shape: bf16[8,256], index: 5, kind: input, shape index: {}]   ;;  %s2288_s6 = inlined_call_operand.vmem [shape: f32[8,1], index: 6, kind: input, shape index: {}]   ;;  %s2289_s7 = inlined_call_operand.hbm [shape: f32[8,128], index: 7, kind: output, shape index: {}]  }
   0x1   :  { %v93_v0 = vld [vmem:[%s2284_s2 + $0xf0] sm:$0xff]  ;;  %1545 = vset.pattern.permute.xlu1 %v1638_v2  ;;  %1544 = vset.pattern.permute.xlu0 %v1638_v2  ;;  %v1546_v3 = vld [vmem:[%s2282_s0 + $0x8] ss:$0 sps:$4 sm:$0xff]   ;;  %v1547_v4 = vld [vmem:[%s2282_s0] sm:$0xff]  }
   0x2   :  { %v77_v1 = vld [vmem:[%s2284_s2 + $0x70] sm:$0xff]  ;;  %247 = vperm.xlu0 %1544, %v93_v0   ;;  %1541 = vmatprep.subr.msk.bf16.mxu0 %vm393_vm0, %v1546_v3  ;;  %v395_v5 = vsel %vm393_vm0, %v1546_v3, 0  ;;  %v94_v6 = vld [vmem:[%s2284_s2 + $0xf8] sm:$0xff]  ;;  %v1548_v8 = vld [vmem:[%s2283_s1] sm:$0xff]  }
   0x3   :  { %167 = vperm.xlu1 %1545, %v77_v1   ;;  %v78_v7 = vld [vmem:[%s2284_s2 + $0x78] sm:$0xff]  ;;  %1490 = vmatpush3.bf16.msra.mxu0 %v395_v5  ;;  %v91_v9 = vld [vmem:[%s2284_s2 + $0xe0] sm:$0xff]  ;;  %v92_v10 = vld [vmem:[%s2284_s2 + $0xe8] sm:$0xff] }
   0x4   :  { %1491 = vmatprep.subr.bf16.mxu0 %v1547_v4  ;;  %1493 = vmatprep.mubr.msk.bf16.mxu0 %vm344_vm1, %v1548_v8  ;;  %v1549_v11 = vld [vmem:[%s2283_s1 + $0x8] sm:$0xff]   ;;  %v1550_v12 = vld [vmem:[%s2283_s1 + $0x10] sm:$0xff]   ;;  %v75_v14 = vld [vmem:[%s2284_s2 + $0x60] sm:$0xff] }
   0x5   :  { %v76_v13 = vld [vmem:[%s2284_s2 + $0x68] sm:$0xff]  ;;  %v90_v15 = vld [vmem:[%s2284_s2 + $0xd8] sm:$0xff]  ;;  %v89_v16 = vld [vmem:[%s2284_s2 + $0xd0] sm:$0xff] }
   0x6   :  { %252 = vperm.xlu0 %1544, %v94_v6   ;;  %v1551_v17 = vld [vmem:[%s2283_s1 + $0x18] sm:$0xff]   ;;  %v1552_v18 = vld [vmem:[%s2283_s1 + $0x20] sm:$0xff]   ;;  %v73_v20 = vld [vmem:[%s2284_s2 + $0x50] sm:$0xff] }
   0x7   :  { %172 = vperm.xlu1 %1545, %v78_v7   ;;  %1492 = vmatpush3.bf16.msra.mxu0 %v1547_v4  ;;  %v74_v19 = vld [vmem:[%s2284_s2 + $0x58] sm:$0xff]  ;;  %v88_v21 = vld [vmem:[%s2284_s2 + $0xc8] sm:$0xff]  ;;  %v87_v22 = vld [vmem:[%s2284_s2 + $0xc0] sm:$0xff] }
   0x8   :  { %v1553_v23 = vld [vmem:[%s2283_s1 + $0x28] sm:$0xff]   ;;  %v1554_v24 = vld [vmem:[%s2283_s1 + $0x30] sm:$0xff]   ;;  %v71_v26 = vld [vmem:[%s2284_s2 + $0x40] sm:$0xff] }
   0x9   :  { %v72_v25 = vld [vmem:[%s2284_s2 + $0x48] sm:$0xff]  ;;  %v86_v27 = vld [vmem:[%s2284_s2 + $0xb8] sm:$0xff]  ;;  %v85_v28 = vld [vmem:[%s2284_s2 + $0xb0] sm:$0xff] }
   0xa   :  { %237 = vperm.xlu0 %1544, %v91_v9   ;;  %1494 = vmatmul.mubr.msk.bf16.vlgmr.msra.gmra.mxu0 %vm344_vm1, %v1549_v11  ;;  %v1555_v29 = vld [vmem:[%s2283_s1 + $0x38] sm:$0xff]   ;;  %v1556_v30 = vld [vmem:[%s2283_s1 + $0x40] sm:$0xff]   ;;  %v69_v32 = vld [vmem:[%s2284_s2 + $0x30] sm:$0xff] }
   0xb   :  { %242 = vperm.xlu1 %1545, %v92_v10   ;;  %1497 = vmatprep.mubr.msk.bf16.mxu0 %vm344_vm1, %v1550_v12  ;;  %v70_v31 = vld [vmem:[%s2284_s2 + $0x38] sm:$0xff]  ;;  %v84_v33 = vld [vmem:[%s2284_s2 + $0xa8] sm:$0xff]  ;;  %v83_v34 = vld [vmem:[%s2284_s2 + $0xa0] sm:$0xff] }
   0xc   :  { %v1557_v35 = vld [vmem:[%s2283_s1 + $0x48] sm:$0xff]   ;;  %v1558_v36 = vld [vmem:[%s2283_s1 + $0x50] sm:$0xff]   ;;  %v67_v38 = vld [vmem:[%s2284_s2 + $0x20] sm:$0xff] }
   0xd   :  { %v68_v37 = vld [vmem:[%s2284_s2 + $0x28] sm:$0xff]  ;;  %v82_v39 = vld [vmem:[%s2284_s2 + $0x98] sm:$0xff]  ;;  %v81_v40 = vld [vmem:[%s2284_s2 + $0x90] sm:$0xff] }
   0xe   :  { %157 = vperm.xlu0 %1544, %v75_v14   ;;  %v1559_v41 = vld [vmem:[%s2283_s1 + $0x58] sm:$0xff]   ;;  %v1560_v42 = vld [vmem:[%s2283_s1 + $0x60] sm:$0xff]  }
   0xf   :  { %162 = vperm.xlu1 %1545, %v76_v13  }
  0x12   :  { %227 = vperm.xlu0 %1544, %v89_v16   ;;  %1498 = vmatmul.mubr.msk.bf16.gmra.mxu0 %vm344_vm1, %v1551_v17 }
  0x13   :  { %232 = vperm.xlu1 %1545, %v90_v15   ;;  %1501 = vmatprep.mubr.msk.bf16.mxu0 %vm344_vm1, %v1552_v18 }
  0x16   :  { %147 = vperm.xlu0 %1544, %v73_v20  }
  0x17   :  { %152 = vperm.xlu1 %1545, %v74_v19  }
  0x1a   :  { %217 = vperm.xlu0 %1544, %v87_v22   ;;  %1502 = vmatmul.mubr.msk.bf16.gmra.mxu0 %vm344_vm1, %v1553_v23 }
  0x1b   :  { %222 = vperm.xlu1 %1545, %v88_v21   ;;  %1505 = vmatprep.mubr.msk.bf16.mxu0 %vm344_vm1, %v1554_v24 }
  0x1e   :  { %137 = vperm.xlu0 %1544, %v71_v26  }
  0x1f   :  { %142 = vperm.xlu1 %1545, %v72_v25  }
  0x22   :  { %207 = vperm.xlu0 %1544, %v85_v28   ;;  %1506 = vmatmul.mubr.msk.bf16.gmra.mxu0 %vm344_vm1, %v1555_v29 }
  0x23   :  { %212 = vperm.xlu1 %1545, %v86_v27   ;;  %1509 = vmatprep.mubr.msk.bf16.mxu0 %vm344_vm1, %v1556_v30 }
  0x26   :  { %127 = vperm.xlu0 %1544, %v69_v32  }
  0x27   :  { %132 = vperm.xlu1 %1545, %v70_v31  }
  0x2a   :  { %197 = vperm.xlu0 %1544, %v83_v34   ;;  %1510 = vmatmul.mubr.msk.bf16.gmra.mxu0 %vm344_vm1, %v1557_v35 }
  0x2b   :  { %202 = vperm.xlu1 %1545, %v84_v33   ;;  %1513 = vmatprep.mubr.msk.bf16.mxu0 %vm344_vm1, %v1558_v36 }
  0x2e   :  { %117 = vperm.xlu0 %1544, %v67_v38  }
  0x2f   :  { %122 = vperm.xlu1 %1545, %v68_v37  }
  0x32   :  { %187 = vperm.xlu0 %1544, %v81_v40  }
  0x33   :  { %192 = vperm.xlu1 %1545, %v82_v39  }
  0x34   :  { %12 = vsyncpa [#allocation3], 0  ;;  %1514 = vmatmul.mubr.msk.bf16.gmra.mxu0 %vm344_vm1, %v1559_v41  ;;  %v66_v43 = vld [vmem:[%s2284_s2 + $0x18] sm:$0xff]  ;;  %v65_v44 = vld [vmem:[%s2284_s2 + $0x10] sm:$0xff] }
  0x35   :  { %1517 = vmatprep.mubr.msk.bf16.mxu0 %vm344_vm1, %v1560_v42  ;;  %v80_v45 = vld [vmem:[%s2284_s2 + $0x88] sm:$0xff]  ;;  %v79_v46 = vld [vmem:[%s2284_s2 + $0x80] sm:$0xff]  ;;  %v1562_v48 = vld [vmem:[%s2283_s1 + $0x70] sm:$0xff]  }
  0x36   :  { %107 = vperm.xlu0 %1544, %v65_v44   ;;  %v1561_v47 = vld [vmem:[%s2283_s1 + $0x68] sm:$0xff]   ;;  %v63_v50 = vld [vmem:[%s2284_s2] sm:$0xff]  ;;  %v669_v51 = vld [vmem:[%s2286_s4 + $0xf8] sm:$0xff] }
  0x37   :  { %112 = vperm.xlu1 %1545, %v66_v43   ;;  %v64_v49 = vld [vmem:[%s2284_s2 + $0x8] sm:$0xff]  ;;  %v668_v52 = vld [vmem:[%s2286_s4 + $0xf0] sm:$0xff]  ;;  %v1563_v53 = vld [vmem:[%s2283_s1 + $0x78] sm:$0xff]  }
  0x38   :  { %v653_v54 = vld [vmem:[%s2286_s4 + $0x78] sm:$0xff]  ;;  %v652_v55 = vld [vmem:[%s2286_s4 + $0x70] sm:$0xff]  ;;  %v667_v56 = vld [vmem:[%s2286_s4 + $0xe8] sm:$0xff] }
  0x39   :  { %v666_v57 = vld [vmem:[%s2286_s4 + $0xe0] sm:$0xff]  ;;  %v651_v58 = vld [vmem:[%s2286_s4 + $0x68] sm:$0xff]  ;;  %v665_v60 = vld [vmem:[%s2286_s4 + $0xd8] sm:$0xff] }
  0x3a   :  { %177 = vperm.xlu0 %1544, %v79_v46   ;;  %v650_v59 = vld [vmem:[%s2286_s4 + $0x60] sm:$0xff]  ;;  %v664_v61 = vld [vmem:[%s2286_s4 + $0xd0] sm:$0xff]  ;;  %v649_v62 = vld [vmem:[%s2286_s4 + $0x58] sm:$0xff] }
  0x3b   :  { %182 = vperm.xlu1 %1545, %v80_v45   ;;  %v648_v63 = vld [vmem:[%s2286_s4 + $0x50] sm:$0xff]  ;;  %v663_v0 = vld [vmem:[%s2286_s4 + $0xc8] sm:$0xff]  ;;  %v662_v1 = vld [vmem:[%s2286_s4 + $0xc0] sm:$0xff] }
  0x3c   :  { %1518 = vmatmul.mubr.msk.bf16.gmra.mxu0 %vm344_vm1, %v1561_v47  ;;  %v647_v2 = vld [vmem:[%s2286_s4 + $0x48] sm:$0xff]  ;;  %v646_v3 = vld [vmem:[%s2286_s4 + $0x40] sm:$0xff]  ;;  %v661_v4 = vld [vmem:[%s2286_s4 + $0xb8] sm:$0xff] }
  0x3d   :  { %1521 = vmatprep.mubr.msk.bf16.mxu0 %vm344_vm1, %v1562_v48  ;;  %v660_v5 = vld [vmem:[%s2286_s4 + $0xb0] sm:$0xff]  ;;  %v645_v6 = vld [vmem:[%s2286_s4 + $0x38] sm:$0xff]  ;;  %v659_v8 = vld [vmem:[%s2286_s4 + $0xa8] sm:$0xff] }
  0x3e   :  { %97 = vperm.xlu0 %1544, %v63_v50   ;;  %v644_v7 = vld [vmem:[%s2286_s4 + $0x30] sm:$0xff]  ;;  %v658_v9 = vld [vmem:[%s2286_s4 + $0xa0] sm:$0xff]  ;;  %v643_v10 = vld [vmem:[%s2286_s4 + $0x28] sm:$0xff] }
  0x3f   :  { %102 = vperm.xlu1 %1545, %v64_v49   ;;  %v642_v11 = vld [vmem:[%s2286_s4 + $0x20] sm:$0xff]  ;;  %v657_v12 = vld [vmem:[%s2286_s4 + $0x98] sm:$0xff]  ;;  %v656_v13 = vld [vmem:[%s2286_s4 + $0x90] sm:$0xff] }
  0x40   :  { %v641_v14 = vld [vmem:[%s2286_s4 + $0x18] sm:$0xff]  ;;  %v640_v15 = vld [vmem:[%s2286_s4 + $0x10] sm:$0xff]  ;;  %v655_v16 = vld [vmem:[%s2286_s4 + $0x88] sm:$0xff] }
  0x41   :  { %v654_v17 = vld [vmem:[%s2286_s4 + $0x80] sm:$0xff]  ;;  %v639_v18 = vld [vmem:[%s2286_s4 + $0x8] sm:$0xff]  ;;  %v1569_v41 = vld [vmem:[%s2285_s3 + $0x54] ss:$8 sps:$4 sm:$0xff]  }
  0x42   :  { %822 = vperm.xlu0 %1544, %v668_v52   ;;  %v638_v19 = vld [vmem:[%s2286_s4] sm:$0xff]  ;;  %1062 = vmatprep.mubr.bf16.mxu1 %v1569_v41 }
  0x43   :  { %827 = vperm.xlu1 %1545, %v669_v51   ;;  %v1200_v22 = vld [vmem:[%s2288_s6] sm:$0xff] }
  0x44   :  { %1522 = vmatmul.mubr.msk.bf16.gmra.mxu0 %vm344_vm1, %v1563_v53  ;;  %v1566_v40 = vld [vmem:[%s2285_s3 + $0x4] ss:$8 sps:$4 sm:$0xff]  }
  0x45   :  { %1022 = vmatprep.mubr.bf16.mxu0 %v1566_v40 }
  0x46   :  { %742 = vperm.xlu0 %1544, %v652_v55  }
  0x47   :  { %747 = vperm.xlu1 %1545, %v653_v54  }
  0x4a   :  { %812 = vperm.xlu0 %1544, %v666_v57  }
  0x4b   :  { %817 = vperm.xlu1 %1545, %v667_v56  }
  0x4e   :  { %732 = vperm.xlu0 %1544, %v650_v59  }
  0x4f   :  { %737 = vperm.xlu1 %1545, %v651_v58  }
  0x52   :  { %802 = vperm.xlu0 %1544, %v664_v61  }
  0x53   :  { %807 = vperm.xlu1 %1545, %v665_v60  }
  0x56   :  { %722 = vperm.xlu0 %1544, %v648_v63  }
  0x57   :  { %727 = vperm.xlu1 %1545, %v649_v62  }
  0x5a   :  { %792 = vperm.xlu0 %1544, %v662_v1  }
  0x5b   :  { %797 = vperm.xlu1 %1545, %v663_v0  }
  0x5e   :  { %712 = vperm.xlu0 %1544, %v646_v3  }
  0x5f   :  { %717 = vperm.xlu1 %1545, %v647_v2  }
  0x62   :  { %782 = vperm.xlu0 %1544, %v660_v5  }
  0x63   :  { %787 = vperm.xlu1 %1545, %v661_v4  }
  0x66   :  { %702 = vperm.xlu0 %1544, %v644_v7  }
  0x67   :  { %707 = vperm.xlu1 %1545, %v645_v6  }
  0x6a   :  { %772 = vperm.xlu0 %1544, %v658_v9  }
  0x6b   :  { %777 = vperm.xlu1 %1545, %v659_v8  }
  0x6e   :  { %692 = vperm.xlu0 %1544, %v642_v11  }
  0x6f   :  { %697 = vperm.xlu1 %1545, %v643_v10  }
  0x72   :  { %762 = vperm.xlu0 %1544, %v656_v13  }
  0x73   :  { %767 = vperm.xlu1 %1545, %v657_v12  }
  0x76   :  { %682 = vperm.xlu0 %1544, %v640_v15  }
  0x77   :  { %687 = vperm.xlu1 %1545, %v641_v14  }
  0x7a   :  { %752 = vperm.xlu0 %1544, %v654_v17  }
  0x7b   :  { %757 = vperm.xlu1 %1545, %v655_v16  }
  0x7d   :  { %v1942_v20 = vpop.permute.xlu0 %247 }
  0x7e   :  { %v1944_v21 = vpop.permute.xlu1 %167  ;;  %672 = vperm.xlu0 %1544, %v638_v19  }
  0x7f   :  { %677 = vperm.xlu1 %1545, %v639_v18  }
  0x81   :  { %v1949_v23 = vpop.permute.xlu0 %252 }
  0x82   :  { %v1951_v24 = vpop.permute.xlu1 %172  ;;  %1203 = vperm.xlu0 %1544, %v1200_v22  }
  0x85   :  { %v1953_v25 = vpop.permute.xlu0 %237 }
  0x86   :  { %v1955_v26 = vpop.permute.xlu1 %242 }
  0x89   :  { %v1957_v27 = vpop.permute.xlu0 %157 }
  0x8a   :  { %v1959_v28 = vpop.permute.xlu1 %162 }
  0x8d   :  { %v1961_v29 = vpop.permute.xlu0 %227 }
  0x8e   :  { %v1963_v30 = vpop.permute.xlu1 %232 }
  0x91   :  { %v1965_v31 = vpop.permute.xlu0 %147 }
  0x92   :  { %v1967_v32 = vpop.permute.xlu1 %152 }
  0x95   :  { %v1969_v33 = vpop.permute.xlu0 %217 }
  0x96   :  { %v1971_v34 = vpop.permute.xlu1 %222 }
  0x99   :  { %v1973_v35 = vpop.permute.xlu0 %137 }
  0x9a   :  { %v1975_v36 = vpop.permute.xlu1 %142 }
  0x9d   :  { %v1977_v37 = vpop.permute.xlu0 %207 }
  0x9e   :  { %v1979_v38 = vpop.permute.xlu1 %212 }
  0xa1   :  { %v128_v39 = vpop.permute.xlu0 %127 }
  0xa2   :  { %v133_v42 = vpop.permute.xlu1 %132 }
  0xa5   :  { %v1987_v43 = vpop.permute.xlu0 %197 }
  0xa6   :  { %v1989_v44 = vpop.permute.xlu1 %202 }
  0xa9   :  { %v118_v45 = vpop.permute.xlu0 %117 }
  0xaa   :  { %v123_v46 = vpop.permute.xlu1 %122 }
  0xad   :  { %v1991_v47 = vpop.permute.xlu0 %187 }
  0xae   :  { %v1993_v48 = vpop.permute.xlu1 %192 }
  0xb1   :  { %v108_v49 = vpop.permute.xlu0 %107 }
  0xb2   :  { %v113_v50 = vpop.permute.xlu1 %112 }
  0xb5   :  { %v1995_v51 = vpop.permute.xlu0 %177 }
  0xb6   :  { %v1997_v53 = vpop.permute.xlu1 %182 }
  0xb9   :  { %v98_v56 = vpop.permute.xlu0 %97 }
  0xba   :  { %v103_v60 = vpop.permute.xlu1 %102 }
  0xca   :  { %v1495_v52 = vpop.f32.mrf.mxu0 }
  0xcb   :  { %v440_v55 = vadd.f32 %v1495_v52, %v108_v49 }
  0xcc   :  { %v431_v54 = vpop.f32.mrf.mxu0 }
  0xcd   :  { %v432_v58 = vadd.f32 %v431_v54, %v98_v56  ;;  %v560_v62 = vmax.f32 %v440_v55, 0.0 }
  0xce   :  { %v1496_v57 = vpop.f32.mrf.mxu0 }
  0xcf   :  { %v443_v59 = vadd.f32 %v1496_v57, %v113_v50  ;;  %v558_v2 = vmax.f32 %v432_v58, 0.0 }
  0xd0   :  { %v434_v61 = vpop.f32.mrf.mxu0 }
  0xd1   :  { %v561_v63 = vmax.f32 %v443_v59, 0.0  ;;  %v435_v0 = vadd.f32 %v434_v61, %v103_v60 }
  0xd2   :  { %v1499_v1 = vpop.f32.mrf.mxu0 }
  0xd3   :  { %v1999_v3 = vpack.c.bf16 %v561_v63, %v560_v62  ;;  %v559_v4 = vmax.f32 %v435_v0, 0.0  ;;  %v456_v7 = vadd.f32 %v1499_v1, %v128_v39 }
  0xd4   :  { %v447_v5 = vpop.f32.mrf.mxu0 }
  0xd5   :  { %v2001_v6 = vpack.c.bf16 %v559_v4, %v558_v2  ;;  %v448_v9 = vadd.f32 %v447_v5, %v118_v45  ;;  %v564_v12 = vmax.f32 %v456_v7, 0.0 }
  0xd6   :  { %v1500_v8 = vpop.f32.mrf.mxu0 }
  0xd7   :  { %v459_v10 = vadd.f32 %v1500_v8, %v133_v42  ;;  %v562_v16 = vmax.f32 %v448_v9, 0.0 }
  0xd8   :  { %v450_v11 = vpop.f32.mrf.mxu0 }
  0xd9   :  { %v565_v13 = vmax.f32 %v459_v10, 0.0  ;;  %v451_v14 = vadd.f32 %v450_v11, %v123_v46 }
  0xda   :  { %v1503_v15 = vpop.f32.mrf.mxu0 }
  0xdb   :  { %v2003_v17 = vpack.c.bf16 %v565_v13, %v564_v12  ;;  %v563_v18 = vmax.f32 %v451_v14, 0.0 }
  0xdc   :  { %v2005_v19 = vpop.f32.mrf.mxu0 }
  0xdd   :  { %v2007_v22 = vpack.c.bf16 %v563_v18, %v562_v16 }
  0xde   :  { %v1504_v40 = vpop.f32.mrf.mxu0 }
  0xe0   :  { %v466_v41 = vpop.f32.mrf.mxu0 }
  0xe2   :  { %v1507_v49 = vpop.f32.mrf.mxu0 }
  0xe3   :  { %v488_v4 = vadd.f32 %v1507_v49, %v1944_v21 }
  0xe4   :  { %v479_v39 = vpop.f32.mrf.mxu0 }
  0xe5   :  { %v572_v16 = vmax.f32 %v488_v4, 0.0 }
  0xe6   :  { %v1508_v50 = vpop.f32.mrf.mxu0 }
  0xe7   :  { %v491_v0 = vadd.f32 %v1508_v50, %v1951_v24 }
  0xe8   :  { %v482_v45 = vpop.f32.mrf.mxu0 }
  0xe9   :  { %v573_v9 = vmax.f32 %v491_v0, 0.0  ;;  %v483_v10 = vadd.f32 %v482_v45, %v1959_v28 }
  0xea   :  { %v2009_v42 = vpop.f32.mrf.mxu0 }
  0xeb   :  { %v629_v50 = vpack.c.bf16 %v573_v9, %v572_v16  ;;  %v1580_v9 = vld [vmem:[%s2285_s3 + $0x20] ss:$8 sps:$4 sm:$0xff]   ;;  %v1590_v16 = vld [vmem:[%s2285_s3 + $0x94] ss:$8 sps:$4 sm:$0xff]  }
  0xec   :  { %v2011_v52 = vpop.f32.mrf.mxu0 }
  0xee   :  { %v2013_v46 = vpop.f32.mrf.mxu0 }
  0xf0   :  { %v2015_v54 = vpop.f32.mrf.mxu0 }
  0xf4   :  { %v1515_v55 = vpop.f32.mrf.mxu0 }
  0xf6   :  { %v2017_v56 = vpop.f32.mrf.mxu0 }
  0xf8   :  { %v1516_v57 = vpop.f32.mrf.mxu0 }
  0xfa   :  { %v514_v58 = vpop.f32.mrf.mxu0 }
  0xfc   :  { %v1519_v59 = vpop.f32.mrf.mxu0 }
  0xfd   :  { %v536_v21 = vadd.f32 %v1519_v59, %v1961_v29  ;;  %v523_v59 = vadd.f32 %v1516_v57, %v1979_v38 }
  0xfe   :  { %v527_v60 = vpop.f32.mrf.mxu0 }
  0xff   :  { %v528_v29 = vadd.f32 %v527_v60, %v1969_v33 }
 0x100   :  { %v1520_v61 = vpop.f32.mrf.mxu0 }
 0x101   :  { %v539_v12 = vadd.f32 %v1520_v61, %v1963_v30 }
 0x102   :  { %v530_v62 = vpop.f32.mrf.mxu0 }
 0x103   :  { %v585_v28 = vmax.f32 %v539_v12, 0.0  ;;  %v531_v45 = vadd.f32 %v530_v62, %v1971_v34  ;;  %v1584_v12 = vld [vmem:[%s2285_s3 + $0x84] ss:$8 sps:$4 sm:$0xff]  }
 0x104   :  { %v1523_v63 = vpop.f32.mrf.mxu0 }
 0x105   :  { %v552_v2 = vadd.f32 %v1523_v63, %v1942_v20  ;;  %v480_v20 = vadd.f32 %v479_v39, %v1957_v27  ;;  %v571_v63 = vmax.f32 %v483_v10, 0.0  ;;  %v584_v27 = vmax.f32 %v536_v21, 0.0  ;;  %v1581_v10 = vld [vmem:[%s2285_s3 + $0x70] ss:$8 sps:$4 sm:$0xff]  }
 0x106   :  { %v543_v1 = vpop.f32.mrf.mxu0  ;;  %v583_v62 = vmax.f32 %v531_v45, 0.0  ;;  %v1593_v21 = vld [vmem:[%s2285_s3 + $0x90] ss:$8 sps:$4 sm:$0xff]  }
 0x107   :  { %v544_v7 = vadd.f32 %v543_v1, %v1953_v25  ;;  %v588_v13 = vmax.f32 %v552_v2, 0.0  ;;  %v570_v61 = vmax.f32 %v480_v20, 0.0  ;;  %v635_v34 = vpack.c.bf16 %v585_v28, %v584_v27  ;;  %v1592_v20 = vld [vmem:[%s2285_s3 + $0x40] ss:$8 sps:$4 sm:$0xff]   ;;  %v1603_v28 = vld [vmem:[%s2285_s3 + $0xd4] ss:$8 sps:$4 sm:$0xff]  }
 0x108   :  { %v1524_v5 = vpop.f32.mrf.mxu0  ;;  %v582_v1 = vmax.f32 %v528_v29, 0.0  ;;  %v581_v2 = vmax.f32 %v523_v59, 0.0  ;;  %v1605_v45 = vld [vmem:[%s2285_s3 + $0xd0] ss:$8 sps:$4 sm:$0xff]   ;;  %v2147_v29 = vpop.permute.xlu0 %822 }
 0x109   :  { %v555_v8 = vadd.f32 %v1524_v5, %v1949_v23  ;;  %v586_v18 = vmax.f32 %v544_v7, 0.0  ;;  %v475_v23 = vadd.f32 %v1504_v40, %v1967_v32  ;;  %v467_v32 = vadd.f32 %v466_v41, %v1975_v36  ;;  %v1611_v27 = vld [vmem:[%s2285_s3 + $0xf0] ss:$8 sps:$4 sm:$0xff]  }
 0x10a   :  { %v546_v11 = vpop.f32.mrf.mxu0  ;;  %v628_v40 = vpack.c.bf16 %v571_v63, %v570_v61  ;;  %v515_v36 = vadd.f32 %v514_v58, %v1989_v44  ;;  %v634_v41 = vpack.c.bf16 %v583_v62, %v582_v1  ;;  %v504_v44 = vadd.f32 %v2009_v42, %v1991_v47  ;;  %v1602_v63 = vld [vmem:[%s2285_s3 + $0xc0] ss:$8 sps:$4 sm:$0xff]   ;;  %v1609_v61 = vld [vmem:[%s2285_s3 + $0xf4] ss:$8 sps:$4 sm:$0xff]  }
 0x10b   :  { %v589_v14 = vmax.f32 %v555_v8, 0.0  ;;  %v547_v24 = vadd.f32 %v546_v11, %v1955_v26  ;;  %v472_v26 = vadd.f32 %v1503_v15, %v1965_v31  ;;  %v569_v39 = vmax.f32 %v475_v23, 0.0  ;;  %v1578_v8 = vld [vmem:[%s2285_s3 + $0x74] ss:$8 sps:$4 sm:$0xff]   ;;  %v1599_v23 = vld [vmem:[%s2285_s3 + $0xb0] ss:$8 sps:$4 sm:$0xff]  }
 0x10c   :  { %v464_v31 = vadd.f32 %v2005_v19, %v1973_v35  ;;  %v520_v15 = vadd.f32 %v1515_v55, %v1977_v37  ;;  %v567_v60 = vmax.f32 %v467_v32, 0.0  ;;  %v512_v35 = vadd.f32 %v2017_v56, %v1987_v43  ;;  %v1582_v11 = vld [vmem:[%s2285_s3 + $0x34] ss:$8 sps:$4 sm:$0xff]   ;;  %v743_v32 = vpop.permute.xlu0 %742 }
 0x10d   :  { %v637_v49 = vpack.c.bf16 %v589_v14, %v588_v13  ;;  %v587_v25 = vmax.f32 %v547_v24, 0.0  ;;  %v568_v0 = vmax.f32 %v472_v26, 0.0  ;;  %v507_v37 = vadd.f32 %v2013_v46, %v1993_v48  ;;  %v1586_v13 = vld [vmem:[%s2285_s3 + $0x30] ss:$8 sps:$4 sm:$0xff]   ;;  %v1587_v14 = vld [vmem:[%s2285_s3 + $0x80] ss:$8 sps:$4 sm:$0xff]  }
 0x10e   :  { %v566_v38 = vmax.f32 %v464_v31, 0.0  ;;  %v580_v57 = vmax.f32 %v520_v15, 0.0  ;;  %v579_v4 = vmax.f32 %v515_v36, 0.0  ;;  %v578_v58 = vmax.f32 %v512_v35, 0.0  ;;  %v1588_v24 = vld [vmem:[%s2285_s3 + $0x44] ss:$8 sps:$4 sm:$0xff]  }
 0x10f   :  { %v636_v30 = vpack.c.bf16 %v587_v25, %v586_v18  ;;  %1355 = vmatprep.subr.bf16.mxu0 %v637_v49  ;;  %1525 = vmatprep.subr.bf16.mxu1 %v637_v49  ;;  %v627_v33 = vpack.c.bf16 %v569_v39, %v568_v0  ;;  %v577_v5 = vmax.f32 %v507_v37, 0.0  ;;  %v499_v43 = vadd.f32 %v2015_v54, %v1997_v53  ;;  %v1576_v54 = vld [vmem:[%s2285_s3 + $0x24] ss:$8 sps:$4 sm:$0xff]   ;;  %v1596_v49 = vld [vmem:[%s2285_s3 + $0xa0] ss:$8 sps:$4 sm:$0xff]   ;;  %v2149_v39 = vpop.permute.xlu1 %827 }
 0x110   :  { %1356 = vmatpush3.bf16.msra.mxu0 %v629_v50  ;;  %1533 = vmatpush3.bf16.msra.mxu1 %v629_v50  ;;  %v626_v19 = vpack.c.bf16 %v567_v60, %v566_v38  ;;  %v633_v55 = vpack.c.bf16 %v581_v2, %v580_v57  ;;  %v632_v56 = vpack.c.bf16 %v579_v4, %v578_v58  ;;  %v576_v48 = vmax.f32 %v504_v44, 0.0  ;;  %v1594_v18 = vld [vmem:[%s2285_s3 + $0xa4] ss:$8 sps:$4 sm:$0xff]   ;;  %v1597_v25 = vld [vmem:[%s2285_s3 + $0xb4] ss:$8 sps:$4 sm:$0xff]   ;;  %v2151_v59 = vpop.permute.xlu0 %812 }
 0x111   :  { %1357 = vmatprep.subr.bf16.mxu0 %v636_v30  ;;  %1526 = vmatprep.subr.bf16.mxu1 %v636_v30  ;;  %v496_v46 = vadd.f32 %v2011_v52, %v1995_v51  ;;  %v575_v47 = vmax.f32 %v499_v43, 0.0  ;;  %v1564_v51 = vld [vmem:[%s2285_s3] ss:$8 sps:$4 sm:$0xff]   ;;  %v1574_v52 = vld [vmem:[%s2285_s3 + $0x10] ss:$8 sps:$4 sm:$0xff]  }
 0x112   :  { %v631_v7 = vpack.c.bf16 %v577_v5, %v576_v48  ;;  %v1600_v50 = vld [vmem:[%s2285_s3 + $0xc4] ss:$8 sps:$4 sm:$0xff]   ;;  %v1608_v26 = vld [vmem:[%s2285_s3 + $0xe0] ss:$8 sps:$4 sm:$0xff]  }
 0x113   :  { %v574_v42 = vmax.f32 %v496_v46, 0.0  ;;  %v1606_v30 = vld [vmem:[%s2285_s3 + $0xe4] ss:$8 sps:$4 sm:$0xff]  }
 0x114   :  { %1358 = vmatpush3.bf16.msra.mxu0 %v628_v40  ;;  %1534 = vmatpush3.bf16.msra.mxu1 %v628_v40  ;;  %v748_v40 = vpop.permute.xlu1 %747  ;;  %v733_v62 = vpop.permute.xlu0 %732  ;;  %v2172_v57 = vld [vmem:[%s2287_s5] sm:$0xff]  ;;  %s1639_s5 = smov [#allocation2]  }
 0x115   :  { %1359 = vmatprep.subr.bf16.mxu0 %v635_v34  ;;  %1527 = vmatprep.subr.bf16.mxu1 %v635_v34  ;;  %v630_v53 = vpack.c.bf16 %v575_v47, %v574_v42  ;;  %2291 = vst [vmem:[#allocation5_spill] sm:$0xff] %v2172_v57  ;;  %s1261_s23 = sshll.u32 %s1639_s5, 4  ;;  %s1262_s23 = int_to_ptr.vmem [resolvable:$true] %s1261_s23 }
 0x116   :  { %s1616_s24 = scalar_lea.vmem %s1262_s23, 128  ;;  %p1621_p1 = scmp.lt.s32.totalorder %s1262_s23, %s1262_s23 }
 0x117   :  { %p1617_p0 = scmp.ne.s32.totalorder %s1262_s23, %s1616_s24  ;;  %p1622_p2 = scmp.lt.s32.totalorder %s1616_s24, %s1616_s24 }
 0x118   :  { %1360 = vmatpush3.bf16.msra.mxu0 %v627_v33  ;;  %1535 = vmatpush3.bf16.msra.mxu1 %v627_v33  ;;  %v2153_v34 = vpop.permute.xlu1 %817  ;;  %v2155_v31 = vpop.permute.xlu0 %802 }
 0x119   :  { %1361 = vmatprep.subr.bf16.mxu0 %v634_v41  ;;  %1528 = vmatprep.subr.bf16.mxu1 %v634_v41  ;;  %p1623_p3 = por %p1622_p2, %p1621_p1 }
 0x11b   :  { %p1624_p4 = pnand %p1623_p3, %p1617_p0 }
 0x11c   :  { %1362 = vmatpush3.bf16.msra.mxu0 %v626_v19  ;;  %1536 = vmatpush3.bf16.msra.mxu1 %v626_v19  ;;  %v738_v0 = vpop.permute.xlu1 %737  ;;  %v723_v1 = vpop.permute.xlu0 %722  ;;  %v1336_v19 = vcombine.high %v2172_v57, %v2172_v57 }
 0x11d   :  { %1363 = vmatprep.subr.bf16.mxu0 %v633_v55  ;;  %1529 = vmatprep.subr.bf16.mxu1 %v633_v55 }
 0x120   :  { %1364 = vmatpush3.bf16.msra.mxu0 %v2003_v17  ;;  %1537 = vmatpush3.bf16.msra.mxu1 %v2003_v17  ;;  %v1567_v17 = vld [vmem:[%s2285_s3 + $0x50] ss:$8 sps:$4 sm:$0xff]   ;;  %v2157_v15 = vpop.permute.xlu1 %807  ;;  %v2159_v60 = vpop.permute.xlu0 %792 }
 0x121   :  { %1365 = vmatprep.subr.bf16.mxu0 %v632_v56  ;;  %1530 = vmatprep.subr.bf16.mxu1 %v632_v56 }
 0x124   :  { %1366 = vmatpush3.bf16.msra.mxu0 %v2007_v22  ;;  %1538 = vmatpush3.bf16.msra.mxu1 %v2007_v22  ;;  %v1570_v22 = vld [vmem:[%s2285_s3 + $0x14] ss:$8 sps:$4 sm:$0xff]   ;;  %v728_v33 = vpop.permute.xlu1 %727  ;;  %v2163_v36 = vpop.permute.xlu0 %712 }
 0x125   :  { %1367 = vmatprep.subr.bf16.mxu0 %v631_v7  ;;  %1531 = vmatprep.subr.bf16.mxu1 %v631_v7 }
 0x128   :  { %1368 = vmatpush3.bf16.msra.mxu0 %v1999_v3  ;;  %1539 = vmatpush3.bf16.msra.mxu1 %v1999_v3  ;;  %v1572_v3 = vld [vmem:[%s2285_s3 + $0x64] ss:$8 sps:$4 sm:$0xff]   ;;  %v2161_v2 = vpop.permute.xlu1 %797  ;;  %v2167_v38 = vpop.permute.xlu0 %782 }
 0x129   :  { %1369 = vmatprep.subr.bf16.mxu0 %v630_v53  ;;  %1532 = vmatprep.subr.bf16.mxu1 %v630_v53 }
 0x12c   :  { %1370 = vmatpush3.bf16.msra.mxu0 %v2001_v6  ;;  %1540 = vmatpush3.bf16.msra.mxu1 %v2001_v6  ;;  %v1575_v6 = vld [vmem:[%s2285_s3 + $0x60] ss:$8 sps:$4 sm:$0xff]   ;;  %v2165_v41 = vpop.permute.xlu1 %717  ;;  %v2178_v37 = vpop.permute.xlu0 %702 }
 0x12f   :  { %1023 = vmatmul.mubr.bf16.vlgmr.msra.gmra.mxu0 %v1564_v51  ;;  %1063 = vmatmul.mubr.bf16.vlgmr.msra.gmra.mxu1 %v1567_v17 }
 0x130   :  { %1030 = vmatprep.mubr.bf16.mxu0 %v1570_v22  ;;  %1070 = vmatprep.mubr.bf16.mxu1 %v1572_v3  ;;  %v2174_v35 = vpop.permute.xlu1 %787  ;;  %v2182_v43 = vpop.permute.xlu0 %772 }
 0x131   :  { %2292 = vst [vmem:[#allocation6_spill] sm:$0xff] %v2182_v43 }
 0x134   :  { %v2180_v4 = vpop.permute.xlu1 %707  ;;  %v2186_v3 = vpop.permute.xlu0 %692 }
 0x135   :  { %2293 = vst [vmem:[#allocation7_spill] sm:$0xff] %v2186_v3 }
 0x137   :  { %1031 = vmatmul.mubr.bf16.gmra.mxu0 %v1574_v52  ;;  %1071 = vmatmul.mubr.bf16.gmra.mxu1 %v1575_v6 }
 0x138   :  { %1038 = vmatprep.mubr.bf16.mxu0 %v1576_v54  ;;  %1078 = vmatprep.mubr.bf16.mxu1 %v1578_v8  ;;  %v2184_v7 = vpop.permute.xlu1 %777 }
 0x13c   :  { %v2190_v54 = vpop.permute.xlu1 %697 }
 0x13d   :  { %2295 = vst [vmem:[#allocation9_spill] sm:$0xff] %v2190_v54 }
 0x13f   :  { %1039 = vmatmul.mubr.bf16.gmra.mxu0 %v1580_v9  ;;  %1079 = vmatmul.mubr.bf16.gmra.mxu1 %v1581_v10 }
 0x140   :  { %1046 = vmatprep.mubr.bf16.mxu0 %v1582_v11  ;;  %1086 = vmatprep.mubr.bf16.mxu1 %v1584_v12 }
 0x147   :  { %1047 = vmatmul.mubr.bf16.gmra.mxu0 %v1586_v13  ;;  %1087 = vmatmul.mubr.bf16.gmra.mxu1 %v1587_v14  ;;  %v763_v14 = vpop.permute.xlu0 %762 }
 0x148   :  { %1054 = vmatprep.mubr.bf16.mxu0 %v1588_v24  ;;  %1094 = vmatprep.mubr.bf16.mxu1 %v1590_v16 }
 0x14f   :  { %1055 = vmatmul.mubr.bf16.gmra.mxu0 %v1592_v20  ;;  %1095 = vmatmul.mubr.bf16.gmra.mxu1 %v1593_v21 }
 0x150   :  { %1102 = vmatprep.mubr.bf16.mxu1 %v1594_v18  ;;  %1245 = vmatprep.mubr.bf16.mxu0 %v1336_v19 }
 0x157   :  { %1103 = vmatmul.mubr.bf16.gmra.mxu1 %v1596_v49  ;;  %v768_v49 = vpop.permute.xlu1 %767 }
 0x158   :  { %1110 = vmatprep.mubr.bf16.mxu1 %v1597_v25 }
 0x15f   :  { %1111 = vmatmul.mubr.bf16.gmra.mxu1 %v1599_v23 }
 0x160   :  { %1118 = vmatprep.mubr.bf16.mxu1 %v1600_v50 }
 0x167   :  { %1119 = vmatmul.mubr.bf16.gmra.mxu1 %v1602_v63 }
 0x168   :  { %1126 = vmatprep.mubr.bf16.mxu1 %v1603_v28 }
 0x16f   :  { %1127 = vmatmul.mubr.bf16.gmra.mxu1 %v1605_v45 }
 0x170   :  { %1134 = vmatprep.mubr.bf16.mxu1 %v1606_v30  ;;  %v2200_v30 = vpop.permute.xlu0 %682 }
 0x171   :  { %2299 = vst [vmem:[#allocation13_spill] sm:$0xff] %v2200_v30 }
 0x177   :  { %1135 = vmatmul.mubr.bf16.gmra.mxu1 %v1608_v26 }
 0x178   :  { %1142 = vmatprep.mubr.bf16.mxu1 %v1609_v61 }
 0x17f   :  { %1143 = vmatmul.mubr.bf16.gmra.mxu1 %v1611_v27  ;;  %v2202_v27 = vpop.permute.xlu1 %687 }
 0x180   :  { %2300 = vst [vmem:[#allocation14_spill] sm:$0xff] %v2202_v27 }
 0x1ef   :  { %v1401_v55 = vpop.f32.mrf.mxu1  ;;  %v2192_v9 = vpop.f32.mrf.mxu0 }
 0x1f0   :  { %2296 = vst [vmem:[#allocation10_spill] sm:$0xff] %v2192_v9 }
 0x1f1   :  { %v1402_v44 = vpop.f32.mrf.mxu1  ;;  %v2194_v16 = vpop.f32.mrf.mxu0 }
 0x1f2   :  { %v1403_v58 = vadd.f32 %v1402_v44, %v1401_v55  ;;  %2297 = vst [vmem:[#allocation11_spill] sm:$0xff] %v2194_v16 }
 0x1f3   :  { %v1404_v5 = vpop.f32.mrf.mxu1  ;;  %v2198_v63 = vpop.f32.mrf.mxu0 }
 0x1f4   :  { %v1065_v48 = vadd.f32 %v1403_v58, %v723_v1  ;;  %2298 = vst [vmem:[#allocation12_spill] sm:$0xff] %v2198_v63  ;;  %v753_v58 = vpop.permute.xlu0 %752 }
 0x1f5   :  { %v1405_v56 = vpop.f32.mrf.mxu1 }
 0x1f6   :  { %v1406_v46 = vadd.f32 %v1405_v56, %v1404_v5  ;;  %v1161_v51 = vmax.f32 %v1065_v48, 0.0 }
 0x1f7   :  { %v1407_v47 = vpop.f32.mrf.mxu1 }
 0x1f8   :  { %v1068_v42 = vadd.f32 %v1406_v46, %v728_v33  ;;  %v758_v46 = vpop.permute.xlu1 %757 }
 0x1f9   :  { %v1408_v53 = vpop.f32.mrf.mxu1 }
 0x1fa   :  { %v1162_v17 = vmax.f32 %v1068_v42, 0.0  ;;  %v1409_v22 = vadd.f32 %v1408_v53, %v1407_v47 }
 0x1fb   :  { %v1410_v52 = vpop.f32.mrf.mxu1 }
 0x1fc   :  { %v2188_v6 = vpack.c.bf16 %v1162_v17, %v1161_v51  ;;  %v1073_v10 = vadd.f32 %v1409_v22, %v733_v62 }
 0x1fd   :  { %v1411_v8 = vpop.f32.mrf.mxu1 }
 0x1fe   :  { %2294 = vst [vmem:[#allocation8_spill] sm:$0xff] %v2188_v6  ;;  %v1412_v11 = vadd.f32 %v1411_v8, %v1410_v52  ;;  %v1163_v20 = vmax.f32 %v1073_v10, 0.0 }
 0x1ff   :  { %v1413_v12 = vpop.f32.mrf.mxu1 }
 0x200   :  { %v1076_v13 = vadd.f32 %v1412_v11, %v738_v0  ;;  %v2204_v0 = vpop.f32.mrf.mxu0 }
 0x201   :  { %v1414_v24 = vpop.f32.mrf.mxu1  ;;  %2301 = vst [vmem:[#allocation15_spill] sm:$0xff] %v2204_v0 }
 0x202   :  { %v1164_v21 = vmax.f32 %v1076_v13, 0.0  ;;  %v1415_v18 = vadd.f32 %v1414_v24, %v1413_v12  ;;  %v2208_v56 = vpop.f32.mrf.mxu0 }
 0x203   :  { %v1416_v25 = vpop.f32.mrf.mxu1  ;;  %2302 = vst [vmem:[#allocation16_spill] sm:$0xff] %v2208_v56 }
 0x204   :  { %v2196_v23 = vpack.c.bf16 %v1164_v21, %v1163_v20  ;;  %v1081_v28 = vadd.f32 %v1415_v18, %v743_v32  ;;  %v2210_v53 = vpop.f32.mrf.mxu0 }
 0x205   :  { %v1417_v50 = vpop.f32.mrf.mxu1  ;;  %2303 = vst [vmem:[#allocation17_spill] sm:$0xff] %v2210_v53 }
 0x206   :  { %v1418_v45 = vadd.f32 %v1417_v50, %v1416_v25  ;;  %v1165_v1 = vmax.f32 %v1081_v28, 0.0  ;;  %v2214_v11 = vpop.f32.mrf.mxu0 }
 0x207   :  { %v1419_v26 = vpop.f32.mrf.mxu1  ;;  %2305 = vst [vmem:[#allocation19_spill] sm:$0xff] %v2214_v11 }
 0x208   :  { %v1084_v61 = vadd.f32 %v1418_v45, %v748_v40  ;;  %v2220_v18 = vpop.f32.mrf.mxu0 }
 0x209   :  { %v1420_v62 = vpop.f32.mrf.mxu1  ;;  %2306 = vst [vmem:[#allocation20_spill] sm:$0xff] %v2220_v18 }
 0x20a   :  { %v1166_v33 = vmax.f32 %v1084_v61, 0.0  ;;  %v1421_v19 = vadd.f32 %v1420_v62, %v1419_v26  ;;  %v2228_v61 = vpop.f32.mrf.mxu0 }
 0x20b   :  { %v1422_v55 = vpop.f32.mrf.mxu1 }
 0x20c   :  { %v2206_v44 = vpack.c.bf16 %v1166_v33, %v1165_v1  ;;  %v1089_v32 = vadd.f32 %v1421_v19, %v753_v58  ;;  %v2230_v1 = vpop.f32.mrf.mxu0 }
 0x20d   :  { %v1423_v5 = vpop.f32.mrf.mxu1 }
 0x20e   :  { %v1424_v48 = vadd.f32 %v1423_v5, %v1422_v55  ;;  %v1167_v51 = vmax.f32 %v1089_v32, 0.0  ;;  %v2232_v19 = vpop.f32.mrf.mxu0 }
 0x20f   :  { %v1425_v47 = vpop.f32.mrf.mxu1 }
 0x210   :  { %v1092_v40 = vadd.f32 %v1424_v48, %v758_v46  ;;  %v2234_v5 = vpop.f32.mrf.mxu0 }
 0x211   :  { %v1426_v42 = vpop.f32.mrf.mxu1 }
 0x212   :  { %v1168_v17 = vmax.f32 %v1092_v40, 0.0  ;;  %v1427_v22 = vadd.f32 %v1426_v42, %v1425_v47  ;;  %v1389_v46 = vpop.f32.mrf.mxu0 }
 0x213   :  { %v1428_v52 = vpop.f32.mrf.mxu1 }
 0x214   :  { %v2212_v8 = vpack.c.bf16 %v1168_v17, %v1167_v51  ;;  %v1097_v12 = vadd.f32 %v1427_v22, %v763_v14  ;;  %v1390_v42 = vpop.f32.mrf.mxu0 }
 0x215   :  { %v1429_v10 = vpop.f32.mrf.mxu1 }
 0x216   :  { %2304 = vst [vmem:[#allocation18_spill] sm:$0xff] %v2212_v8  ;;  %v1430_v13 = vadd.f32 %v1429_v10, %v1428_v52  ;;  %v1169_v25 = vmax.f32 %v1097_v12, 0.0  ;;  %v1392_v22 = vpop.f32.mrf.mxu0 }
 0x217   :  { %v2216_v24 = vpop.f32.mrf.mxu1 }
 0x218   :  { %v1100_v20 = vadd.f32 %v1430_v13, %v768_v49  ;;  %v1393_v12 = vpop.f32.mrf.mxu0 }
 0x219   :  { %v2218_v21 = vpop.f32.mrf.mxu1 }
 0x21a   :  { %v1170_v50 = vmax.f32 %v1100_v20, 0.0 }
 0x21b   :  { %v2222_v28 = vpop.f32.mrf.mxu1 }
 0x21c   :  { %v2224_v45 = vpack.c.bf16 %v1170_v50, %v1169_v25  ;;  %v1395_v25 = vpop.f32.mrf.mxu0 }
 0x21d   :  { %v2226_v26 = vpop.f32.mrf.mxu1 }
 0x21e   :  { %2307 = vst [vmem:[#allocation21_spill] sm:$0xff] %v2224_v45  ;;  %v1396_v8 = vpop.f32.mrf.mxu0 }
 0x21f   :  { %v1437_v62 = vpop.f32.mrf.mxu1 }
 0x220   :  { %v1398_v0 = vpop.f32.mrf.mxu0 }
 0x221   :  { %v1438_v14 = vpop.f32.mrf.mxu1 }
 0x222   :  { %v1399_v6 = vpop.f32.mrf.mxu0 }
 0x223   :  { %v1440_v33 = vpop.f32.mrf.mxu1 }
 0x225   :  { %v1441_v49 = vpop.f32.mrf.mxu1 }
 0x227   :  { %v1443_v55 = vpop.f32.mrf.mxu1 }
 0x229   :  { %v1444_v58 = vpop.f32.mrf.mxu1 }
 0x22b   :  { %v1446_v32 = vpop.f32.mrf.mxu1 }
 0x22d   :  { %v1447_v48 = vpop.f32.mrf.mxu1 }
 0x22e   :  { %v1448_v43 = vadd.f32 %v1447_v48, %v1446_v32 }
 0x22f   :  { %v1449_v47 = vpop.f32.mrf.mxu1 }
 0x231   :  { %v1450_v40 = vpop.f32.mrf.mxu1 }
 0x232   :  { %v1451_v54 = vadd.f32 %v1450_v40, %v1449_v47  ;;  %v2316_v47 = vld [vmem:[#allocation12_spill] sm:$0xff]  ;;  %v2317_v40 = vld [vmem:[#allocation15_spill] sm:$0xff] }
 0x233   :  { %v1452_v51 = vpop.f32.mrf.mxu1 }
 0x235   :  { %v1453_v17 = vpop.f32.mrf.mxu1 }
 0x236   :  { %v1454_v63 = vadd.f32 %v1453_v17, %v1452_v51  ;;  %v1129_v51 = vadd.f32 %v1451_v54, %v2155_v31 }
 0x237   :  { %v1455_v52 = vpop.f32.mrf.mxu1 }
 0x239   :  { %v1456_v10 = vpop.f32.mrf.mxu1 }
 0x23a   :  { %v1457_v9 = vadd.f32 %v1456_v10, %v1455_v52  ;;  %v1445_v10 = vadd.f32 %v1444_v58, %v1443_v55 }
 0x23b   :  { %v1458_v13 = vpop.f32.mrf.mxu1 }
 0x23c   :  { %v1137_v18 = vadd.f32 %v1457_v9, %v2151_v59  ;;  %v1439_v9 = vadd.f32 %v1438_v14, %v1437_v62  ;;  %v2310_v62 = vld [vmem:[#allocation19_spill] sm:$0xff]  ;;  %v2311_v14 = vld [vmem:[#allocation20_spill] sm:$0xff] }
 0x23d   :  { %v1459_v20 = vpop.f32.mrf.mxu1 }
 0x23e   :  { %v1460_v45 = vadd.f32 %v1459_v20, %v1458_v13  ;;  %v1132_v13 = vadd.f32 %v1454_v63, %v2157_v15  ;;  %v1179_v17 = vmax.f32 %v1137_v18, 0.0  ;;  %v1121_v15 = vadd.f32 %v1445_v10, %v2159_v60  ;;  %v2321_v10 = vld [vmem:[#allocation13_spill] sm:$0xff] }
 0x23f   :  { %v1461_v50 = vpop.f32.mrf.mxu1  ;;  %v1394_v63 = vadd.f32 %v1393_v12, %v1392_v22  ;;  %v1433_v60 = vadd.f32 %v2218_v21, %v2216_v24  ;;  %v2308_v21 = vld [vmem:[#allocation8_spill] sm:$0xff]  ;;  %v2318_v22 = vld [vmem:[#allocation14_spill] sm:$0xff] }
 0x240   :  { %v1140_v3 = vadd.f32 %v1460_v45, %v2153_v34  ;;  %v1400_v45 = vadd.f32 %v1399_v6, %v1398_v0  ;;  %v1436_v6 = vadd.f32 %v2226_v26, %v2222_v28 }
 0x241   :  { %v1462_v57 = vpop.f32.mrf.mxu1 }
 0x242   :  { %v1463_v30 = vadd.f32 %v1462_v57, %v1461_v50  ;;  %v1180_v57 = vmax.f32 %v1140_v3, 0.0  ;;  %v1177_v3 = vmax.f32 %v1129_v51, 0.0  ;;  %v1060_v31 = vadd.f32 %v1400_v45, %v2165_v41 }
 0x243   :  { %v1464_v16 = vpop.f32.mrf.mxu1  ;;  %v1388_v41 = vadd.f32 %v2234_v5, %v2232_v19  ;;  %v2313_v5 = vld [vmem:[#allocation16_spill] sm:$0xff] }
 0x244   :  { %v1145_v53 = vadd.f32 %v1463_v30, %v2147_v29  ;;  %v1442_v29 = vadd.f32 %v1441_v49, %v1440_v33  ;;  %v1178_v30 = vmax.f32 %v1132_v13, 0.0  ;;  %v1198_v59 = vpack.c.bf16 %v1180_v57, %v1179_v17  ;;  %v2312_v33 = vld [vmem:[#allocation9_spill] sm:$0xff]  ;;  %v2319_v57 = vld [vmem:[#allocation10_spill] sm:$0xff] }
 0x245   :  { %v1465_v27 = vpop.f32.mrf.mxu1  ;;  %v1044_v49 = vadd.f32 %v1388_v41, %v2312_v33 }
 0x246   :  { %v1466_v56 = vadd.f32 %v1465_v27, %v1464_v16  ;;  %v1181_v20 = vmax.f32 %v1145_v53, 0.0  ;;  %v1124_v16 = vadd.f32 %v1448_v43, %v2161_v2  ;;  %v1116_v54 = vadd.f32 %v1442_v29, %v2174_v35 }
 0x247   :  { %v1197_v43 = vpack.c.bf16 %v1178_v30, %v1177_v3  ;;  %v1391_v27 = vadd.f32 %v1390_v42, %v1389_v46  ;;  %v1052_v53 = vadd.f32 %v1394_v63, %v2180_v4  ;;  %v1160_v35 = vmax.f32 %v1060_v31, 0.0  ;;  %v673_v30 = vpop.permute.xlu0 %672  ;;  %v2323_v31 = vld [vmem:[#allocation18_spill] sm:$0xff] }
 0x248   :  { %v1148_v11 = vadd.f32 %v1466_v56, %v2149_v39  ;;  %v1397_v39 = vadd.f32 %v1396_v8, %v1395_v25  ;;  %v1176_v2 = vmax.f32 %v1124_v16, 0.0  ;;  %v1175_v56 = vmax.f32 %v1121_v15, 0.0 }
 0x249   :  { %v1108_v8 = vadd.f32 %v1436_v6, %v2184_v7  ;;  %v1382_v4 = vadd.f32 %v2311_v14, %v2310_v62  ;;  %v1158_v7 = vmax.f32 %v1052_v53, 0.0  ;;  %v1376_v42 = vadd.f32 %v2317_v40, %v2316_v47 }
 0x24a   :  { %v1182_v52 = vmax.f32 %v1148_v11, 0.0  ;;  %v1057_v0 = vadd.f32 %v1397_v39, %v2163_v36  ;;  %v1174_v11 = vmax.f32 %v1116_v54, 0.0  ;;  %v1196_v18 = vpack.c.bf16 %v1176_v2, %v1175_v56  ;;  %v2324_v54 = vld [vmem:[#allocation5_spill] sm:$0xff] }
 0x24b   :  { %v1385_v36 = vadd.f32 %v2230_v1, %v2228_v61  ;;  %v1172_v55 = vmax.f32 %v1108_v8, 0.0  ;;  %v2314_v61 = vld [vmem:[#allocation17_spill] sm:$0xff]  ;;  %v1036_v12 = vadd.f32 %v1382_v4, %v2318_v22  ;;  %v1156_v25 = vmax.f32 %v1044_v49, 0.0 }
 0x24c   :  { %v1199_v34 = vpack.c.bf16 %v1182_v52, %v1181_v20  ;;  %v1159_v24 = vmax.f32 %v1057_v0, 0.0  ;;  %v1379_v1 = vadd.f32 %v2314_v61, %v2313_v5  ;;  %v2320_v20 = vld [vmem:[#allocation11_spill] sm:$0xff]  ;;  %v1335_v2 = vcombine.low %v2324_v54, %v2324_v54 }
 0x24d   :  { %v1373_v52 = vadd.f32 %v2320_v20, %v2319_v57  ;;  %v1154_v29 = vmax.f32 %v1036_v12, 0.0 }
 0x24e   :  { %1467 = vmatprep.subr.bf16.mxu0 %v1199_v34  ;;  %v1188_v19 = vpack.c.bf16 %v1160_v35, %v1159_v24  ;;  %v1033_v51 = vadd.f32 %v1379_v1, %v2321_v10  ;;  %v678_v34 = vpop.permute.xlu1 %677 }
 0x24f   :  { %1468 = vmatpush3.bf16.msra.mxu0 %v2206_v44  ;;  %v1113_v44 = vadd.f32 %v1439_v9, %v2167_v38  ;;  %v2309_v38 = vld [vmem:[#allocation6_spill] sm:$0xff]  ;;  %v1028_v45 = vadd.f32 %v1376_v42, %v678_v34  ;;  %v2322_v9 = vld [vmem:[#allocation21_spill] sm:$0xff] }
 0x250   :  { %1469 = vmatprep.subr.bf16.mxu0 %v1198_v59  ;;  %v1105_v28 = vadd.f32 %v1433_v60, %v2309_v38  ;;  %v1025_v59 = vadd.f32 %v1373_v52, %v673_v30  ;;  %v1153_v39 = vmax.f32 %v1033_v51, 0.0  ;;  %v1204_v60 = vpop.permute.xlu0 %1203 }
 0x251   :  { %v1173_v26 = vmax.f32 %v1113_v44, 0.0  ;;  %v1152_v15 = vmax.f32 %v1028_v45, 0.0 }
 0x252   :  { %v1171_v46 = vmax.f32 %v1105_v28, 0.0  ;;  %v1185_v3 = vpack.c.bf16 %v1154_v29, %v1153_v39  ;;  %v1151_v63 = vmax.f32 %v1025_v59, 0.0 }
 0x253   :  { %1470 = vmatpush3.bf16.msra.mxu0 %v2196_v23  ;;  %v1049_v23 = vadd.f32 %v1391_v27, %v2178_v37  ;;  %v1195_v58 = vpack.c.bf16 %v1174_v11, %v1173_v26  ;;  %v2315_v37 = vld [vmem:[#allocation7_spill] sm:$0xff] }
 0x254   :  { %1471 = vmatprep.subr.bf16.mxu0 %v1197_v43  ;;  %v1041_v32 = vadd.f32 %v1385_v36, %v2315_v37  ;;  %v1194_v13 = vpack.c.bf16 %v1172_v55, %v1171_v46  ;;  %v1184_v6 = vpack.c.bf16 %v1152_v15, %v1151_v63 }
 0x255   :  { %v1157_v48 = vmax.f32 %v1049_v23, 0.0 }
 0x256   :  { %v1155_v17 = vmax.f32 %v1041_v32, 0.0 }
 0x257   :  { %1472 = vmatpush3.bf16.msra.mxu0 %v2308_v21  ;;  %v1187_v50 = vpack.c.bf16 %v1158_v7, %v1157_v48 }
 0x258   :  { %1473 = vmatprep.subr.bf16.mxu0 %v1196_v18  ;;  %v1186_v16 = vpack.c.bf16 %v1156_v25, %v1155_v17 }
 0x25b   :  { %1474 = vmatpush3.bf16.msra.mxu0 %v1188_v19 }
 0x25c   :  { %1475 = vmatprep.subr.bf16.mxu0 %v1195_v58 }
 0x25f   :  { %1476 = vmatpush3.bf16.msra.mxu0 %v1187_v50 }
 0x260   :  { %1477 = vmatprep.subr.bf16.mxu0 %v1194_v13 }
 0x263   :  { %1478 = vmatpush3.bf16.msra.mxu0 %v1186_v16 }
 0x264   :  { %1479 = vmatprep.subr.bf16.mxu0 %v2322_v9 }
 0x267   :  { %1480 = vmatpush3.bf16.msra.mxu0 %v1185_v3 }
 0x268   :  { %1481 = vmatprep.subr.bf16.mxu0 %v2323_v31 }
 0x26b   :  { %1482 = vmatpush3.bf16.msra.mxu0 %v1184_v6 }
 0x26e   :  { %1246 = vmatmul.mubr.bf16.vlgmr.msra.gmra.mxu0 %v1335_v2 }
 0x32e   :  { %v1483_v43 = vpop.f32.mrf.mxu0 }
 0x330   :  { %v1484_v27 = vpop.f32.mrf.mxu0 }
 0x331   :  { %v1485_v0 = vadd.f32 %v1484_v27, %v1483_v43 }
 0x332   :  { %v1486_v44 = vpop.f32.mrf.mxu0 }
 0x333   :  { %v1248_v56 = vadd.f32 %v1485_v0, %v1204_v60 }
 0x334   :  { %v1487_v41 = vpop.f32.mrf.mxu0 }
 0x335   :  { %1614 = vtanh.f32 %v1248_v56 }
 0x342   :  { %v1615_v53 = vpop.eup %1614 }
 0x343   :  { %1254 = vst [vmem:[#allocation2] sm:$0xff] %v1615_v53 }
 0x344   :  { %1627 = shalt.err (!%p1624_p4)
}
 0x345   :  { %1264 = dma.vmem_to_hbm [thread:$0]  %s1262_s23, 128, %s2289_s7, [#allocation3]  }
 0x346   :  { %1636 = dma.done.wait [#allocation3], 128  }
 0x347   :  { %1637 = vsyncadd [#allocation3], 4294967168 }
 0x348   :  { %1268 = vsyncpa [#allocation3], 1 }

</bundles_post_ra>
